<compile_context>
chip_gen: v5e
topology: v5e:2x2
jax: 0.10.0
libtpu: 0.0.40
codegen_flags: <defaults>
</compile_context>

<pallas_src>
import math

import jax
import jax.numpy as jnp
import numpy as np
from jax.experimental import pallas as pl
from jax.experimental.pallas import tpu as pltpu


def _round_up(x, m):
    return (x + m - 1) // m * m


def _tpu_vmem_capacity_bytes():
    """Physical VMEM per TensorCore; conservative 64 MiB (v7x) fallback."""
    try:
        return int(pltpu.get_tpu_info().vmem_capacity_bytes)
    except Exception:
        return 64 << 20


def _pick_tk(k_pad, cap=2048):
    """Largest multiple of 128 that divides k_pad exactly and is <= cap.

    For production FPN (Din=12544 -> k_pad=12544=98*128) this yields 1792
    (7 K-steps) with zero extra padding streamed.
    """
    units = k_pad // 128
    best = 1
    for d in range(1, units + 1):
        if units % d == 0 and d * 128 <= cap:
            best = d
    return best * 128


def _const_index_spec(block_shape):
    """BlockSpec for an operand whose block index never changes across the grid.

    Single-buffered when pipeline_mode is available (double-buffering a
    constant block is pure VMEM waste -- matters on v7x's 64 MiB budget).
    """
    ndim = len(block_shape)
    index_map = lambda *_: (0,) * ndim
    try:
        return pl.BlockSpec(block_shape, index_map, pipeline_mode=pl.Buffered(1))
    except Exception:  # older JAX without pipeline_mode kwarg
        return pl.BlockSpec(block_shape, index_map)


# ----------------------------------------------------------------------------
# Pallas kernels: fused 2-layer MLP head
#   out = relu( relu(x @ W6 + b6) @ W7 + b7 )
# ----------------------------------------------------------------------------
def _mlp_head_kernel_ktiled(x_ref, w6_ref, b6_ref, w7_ref, b7_ref, out_ref, acc_ref):
    """K-tiled variant: grid = (N tiles, Din tiles), reduction axis last."""
    k = pl.program_id(1)

    @pl.when(k == 0)
    def _init():
        # Fold the fc6 bias into the accumulator init (saves a VALU pass).
        acc_ref[...] = jnp.broadcast_to(b6_ref[...], acc_ref.shape)

    # bf16 x bf16 -> f32 accumulate on the MXU.
    acc_ref[...] += jnp.dot(
        x_ref[...], w6_ref[...], preferred_element_type=jnp.float32
    )

    @pl.when(k == pl.num_programs(1) - 1)
    def _finalize():
        h = jnp.maximum(acc_ref[...], 0.0).astype(w7_ref.dtype)
        o = jnp.dot(h, w7_ref[...], preferred_element_type=jnp.float32) + b7_ref[...]
        out_ref[...] = jnp.maximum(o, 0.0).astype(out_ref.dtype)


def _mlp_head_kernel_resident(x_ref, w6_ref, b6_ref, w7_ref, b7_ref, out_ref):
    """Resident-W6 variant: grid = (N tiles,), no reduction axis / no scratch."""
    h = jnp.dot(x_ref[...], w6_ref[...], preferred_element_type=jnp.float32)
    h = jnp.maximum(h + b6_ref[...], 0.0).astype(w7_ref.dtype)
    o = jnp.dot(h, w7_ref[...], preferred_element_type=jnp.float32) + b7_ref[...]
    out_ref[...] = jnp.maximum(o, 0.0).astype(out_ref.dtype)


# ----------------------------------------------------------------------------
# Weight preparation (hoisted out of the per-call path).
# ----------------------------------------------------------------------------
def prepare_mlp_params(w6, b6, w7, b7):
    """Pad + bf16-cast the MLP weights ONCE; reuse across forward calls.

    w6: [Din, H]; b6: [1, H] (or [H]); w7: [H, Dout]; b7: [1, Dout] (or [Dout]).
    """
    d_in, hidden = w6.shape
    d_out = w7.shape[1]
    k_pad = _round_up(d_in, 128)
    h_pad = _round_up(hidden, 128)
    o_pad = _round_up(d_out, 128)

    w6b = jnp.pad(w6, ((0, k_pad - d_in), (0, h_pad - hidden))).astype(jnp.bfloat16)
    b6p = jnp.pad(jnp.reshape(b6, (1, -1)), ((0, 0), (0, h_pad - hidden))).astype(jnp.float32)
    w7b = jnp.pad(w7, ((0, h_pad - hidden), (0, o_pad - d_out))).astype(jnp.bfloat16)
    b7p = jnp.pad(jnp.reshape(b7, (1, -1)), ((0, 0), (0, o_pad - d_out))).astype(jnp.float32)
    return dict(
        w6=w6b, b6=b6p, w7=w7b, b7=b7p,
        d_in=d_in, hidden=hidden, d_out=d_out,
        k_pad=k_pad, h_pad=h_pad, o_pad=o_pad,
    )


def mlp_head(x_flat, prepared, *, force_variant=None):
    """Fused fc6 -> ReLU -> fc7 -> ReLU.

    x_flat: [N, Din] (f32 or bf16); prepared: output of prepare_mlp_params().
    Returns [N, Dout] f32.
    """
    n, d_in = x_flat.shape
    if d_in != prepared["d_in"]:
        raise ValueError(f"flattened dim {d_in} != prepared Din {prepared['d_in']}")
    k_pad, h_pad, o_pad = prepared["k_pad"], prepared["h_pad"], prepared["o_pad"]
    d_out = prepared["d_out"]
    w6b, b6p, w7b, b7p = prepared["w6"], prepared["b6"], prepared["w7"], prepared["b7"]

    # ROI tile: multiple of 16 (bf16 packs 16 sublanes/vreg); capped at 512 so
    # production N (1-2k ROIs) still yields >=2 "parallel" i-tiles for v7x's
    # two TensorCores while amortizing W6 streaming in the tiled variant.
    tm = min(512, _round_up(max(n, 1), 16))
    n_pad = _round_up(n, tm)
    n_tiles = n_pad // tm

    xb = x_flat if x_flat.dtype == jnp.bfloat16 else x_flat.astype(jnp.bfloat16)
    xb = jnp.pad(xb, ((0, n_pad - n), (0, k_pad - d_in)))

    vmem_cap = _tpu_vmem_capacity_bytes()

    # Footprint of the resident-W6 variant (W6/W7/biases single-buffered,
    # x/out double-buffered by the pipeline).
    resident_bytes = (
        k_pad * h_pad * 2          # W6 resident (bf16, 1 buffer)
        + 2 * tm * k_pad * 2       # x tiles (bf16, double-buffered)
        + h_pad * o_pad * 2        # W7 (bf16, 1 buffer)
        + 2 * tm * o_pad * 4       # out tiles (f32, double-buffered)
        + (h_pad + o_pad) * 4      # biases
    )
    use_resident = resident_bytes <= vmem_cap // 2
    if force_variant == "resident":
        use_resident = True
    elif force_variant == "tiled":
        use_resident = False

    flops = 2 * n_pad * (k_pad * h_pad + h_pad * o_pad)

    if use_resident:
        # ---- resident-W6, no K axis: W6 read from HBM exactly once ----------
        grid = (n_tiles,)
        grid_spec = pltpu.PrefetchScalarGridSpec(
            num_scalar_prefetch=0,
            grid=grid,
            in_specs=[
                pl.BlockSpec((tm, k_pad), lambda i: (i, 0)),   # x  (streamed)
                _const_index_spec((k_pad, h_pad)),             # W6 (resident)
                _const_index_spec((1, h_pad)),                 # b6
                _const_index_spec((h_pad, o_pad)),             # W7 (resident)
                _const_index_spec((1, o_pad)),                 # b7
            ],
            out_specs=pl.BlockSpec((tm, o_pad), lambda i: (i, 0)),
            scratch_shapes=[],
        )
        kernel = _mlp_head_kernel_resident
        dim_sem = ("parallel",)
        # Generous ceiling: even if the compiler double-buffers a constant
        # operand, this stays under the physical budget.
        vmem_limit = int(vmem_cap * 0.85)
        bytes_accessed = (
            xb.size * 2 + w6b.size * 2 + w7b.size * 2
            + (b6p.size + b7p.size) * 4 + n_pad * o_pad * 4
        )
    else:
        # ---- K-tiled streaming variant (fits v7x's 64 MiB per-TC VMEM) ------
        tk = _pick_tk(k_pad)
        grid = (n_tiles, k_pad // tk)
        grid_spec = pltpu.PrefetchScalarGridSpec(
            num_scalar_prefetch=0,
            grid=grid,
            in_specs=[
                pl.BlockSpec((tm, tk), lambda i, k: (i, k)),     # x  (streamed)
                pl.BlockSpec((tk, h_pad), lambda i, k: (k, 0)),  # W6 (streamed)
                _const_index_spec((1, h_pad)),                   # b6
                _const_index_spec((h_pad, o_pad)),               # W7
                _const_index_spec((1, o_pad)),                   # b7
            ],
            out_specs=pl.BlockSpec((tm, o_pad), lambda i, k: (i, 0)),
            scratch_shapes=[pltpu.VMEM((tm, h_pad), jnp.float32)],
        )
        kernel = _mlp_head_kernel_ktiled
        dim_sem = ("parallel", "arbitrary")
        vmem_bytes = (
            2 * tm * tk * 2            # x tiles (bf16)
            + 2 * tk * h_pad * 2       # W6 tiles (bf16)
            + h_pad * o_pad * 2        # W7 (single-buffered)
            + (h_pad + o_pad) * 4      # biases
            + 2 * tm * o_pad * 4       # out tiles (f32)
            + tm * h_pad * 4           # f32 accumulator scratch
        )
        vmem_limit = int(min(max(vmem_bytes * 2, 32 << 20), int(vmem_cap * 0.75)))
        # W6 is re-streamed once per ROI tile -> count it n_tiles times.
        bytes_accessed = (
            xb.size * 2 + n_tiles * w6b.size * 2 + w7b.size * 2
            + (b6p.size + b7p.size) * 4 + n_pad * o_pad * 4
        )

    cost = pl.CostEstimate(
        flops=int(flops), transcendentals=0, bytes_accessed=int(bytes_accessed)
    )

    out = pl.pallas_call(
        kernel,
        out_shape=jax.ShapeDtypeStruct((n_pad, o_pad), jnp.float32),
        grid_spec=grid_spec,
        compiler_params=pltpu.CompilerParams(
            dimension_semantics=dim_sem,
            vmem_limit_bytes=vmem_limit,
        ),
        cost_estimate=cost,
    )(xb, w6b, b6p, w7b, b7p)

    return out[:n, :d_out]


# ----------------------------------------------------------------------------
# Plain-JAX glue: multi-level FPN ROIAlign pooler (maskrcnn-benchmark style,
# non-aligned variant).  Data-dependent bilinear gather -> kept outside Pallas.
# TODO(synk): group ROIs per FPN level (or move ROIAlign into Pallas with the
# per-ROI level table as scalar prefetch + manual row DMAs) instead of the
# compute-all-levels-then-select loop below; adaptive sampling_ratio<=0 is not
# supported here.
# ----------------------------------------------------------------------------
def _bilinear_sample(feat_chw, ys, xs):
    """feat_chw: [C, H, W]; ys/xs: [P] float sample coords. Returns [C, P]."""
    c, h, w = feat_chw.shape
    valid = (ys > -1.0) & (ys < h) & (xs > -1.0) & (xs < w)
    y = jnp.clip(ys, 0.0, h - 1.0)
    x = jnp.clip(xs, 0.0, w - 1.0)
    y0 = jnp.floor(y).astype(jnp.int32)
    x0 = jnp.floor(x).astype(jnp.int32)
    y1 = jnp.minimum(y0 + 1, h - 1)
    x1 = jnp.minimum(x0 + 1, w - 1)
    ly = y - y0.astype(jnp.float32)
    lx = x - x0.astype(jnp.float32)
    hy = 1.0 - ly
    hx = 1.0 - lx
    v00 = feat_chw[:, y0, x0]
    v01 = feat_chw[:, y0, x1]
    v10 = feat_chw[:, y1, x0]
    v11 = feat_chw[:, y1, x1]
    val = hy * hx * v00 + hy * lx * v01 + ly * hx * v10 + ly * lx * v11
    return jnp.where(valid[None, :], val, 0.0)


def _roi_align_one(feat_lvl, roi, spatial_scale, resolution, sampling_ratio):
    """feat_lvl: [B, C, H, W]; roi: [5] = (batch_idx, x1, y1, x2, y2)."""
    c = feat_lvl.shape[1]
    batch_idx = roi[0].astype(jnp.int32)
    x1 = roi[1] * spatial_scale
    y1 = roi[2] * spatial_scale
    x2 = roi[3] * spatial_scale
    y2 = roi[4] * spatial_scale
    roi_w = jnp.maximum(x2 - x1, 1.0)
    roi_h = jnp.maximum(y2 - y1, 1.0)
    bin_w = roi_w / resolution
    bin_h = roi_h / resolution

    sr = sampling_ratio
    ph = jnp.arange(resolution, dtype=jnp.float32)
    iy = jnp.arange(sr, dtype=jnp.float32)
    ys = y1 + (ph[:, None] + (iy[None, :] + 0.5) / sr) * bin_h  # [R, sr]
    xs = x1 + (ph[:, None] + (iy[None, :] + 0.5) / sr) * bin_w  # [R, sr]
    yy = jnp.broadcast_to(ys[:, None, :, None], (resolution, resolution, sr, sr)).reshape(-1)
    xx = jnp.broadcast_to(xs[None, :, None, :], (resolution, resolution, sr, sr)).reshape(-1)

    feat_chw = jnp.take(feat_lvl, batch_idx, axis=0)  # [C, H, W]
    vals = _bilinear_sample(feat_chw, yy, xx)  # [C, R*R*sr*sr]
    vals = vals.reshape(c, resolution, resolution, sr * sr).mean(axis=-1)
    return vals  # [C, R, R]


def fpn_pooler(feats, rois, scales, resolution, sampling_ratio,
               out_dtype=jnp.float32):
    """feats: list of [B, C, Hl, Wl]; rois: [N, 5]. Returns [N, C, R, R]."""
    k_min = int(-math.log2(scales[0]))
    k_max = int(-math.log2(scales[-1]))
    widths = rois[:, 3] - rois[:, 1]
    heights = rois[:, 4] - rois[:, 2]
    s = jnp.sqrt(widths * heights)
    # LevelMapper: canonical_scale=224, canonical_level=4, eps=1e-6
    target = jnp.floor(4.0 + jnp.log2(s / 224.0 + 1e-6))
    target = jnp.clip(target, k_min, k_max).astype(jnp.int32) - k_min

    per_level = []
    for feat, scale in zip(feats, scales):
        ra = jax.vmap(_roi_align_one, in_axes=(None, 0, None, None, None))(
            feat, rois, scale, resolution, sampling_ratio
        )
        per_level.append(ra)  # [N, C, R, R]

    out = per_level[0]
    for lvl in range(1, len(per_level)):
        mask = (target == lvl)[:, None, None, None]
        out = jnp.where(mask, per_level[lvl], out)
    # Emit in the kernel's streaming dtype directly (avoids a separate f32
    # x_flat pad+cast HBM pass before the MLP kernel).
    return out.astype(out_dtype)


# ----------------------------------------------------------------------------
# FPN2MLPFeatureExtractor
# ----------------------------------------------------------------------------
def make_fc_params(key, dim_in, dim_out):
    """make_fc(): kaiming_uniform_(weight, a=1), bias = 0.  Stored as [in, out]."""
    bound = math.sqrt(3.0 / dim_in)  # sqrt(6 / ((1 + a^2) * fan_in)), a=1
    w = jax.random.uniform(key, (dim_in, dim_out), jnp.float32, -bound, bound)
    b = jnp.zeros((1, dim_out), jnp.float32)
    return w, b


def fpn2mlp_forward(feats, rois, prepared, *, scales, resolution, sampling_ratio):
    pooled = fpn_pooler(feats, rois, scales, resolution, sampling_ratio,
                        out_dtype=jnp.bfloat16)                  # [N, C, R, R]
    x_flat = pooled.reshape(pooled.shape[0], -1)  # row-major == torch .view(N, -1)
    return mlp_head(x_flat, prepared)


if __name__ == "__main__":
    # Small synthetic config (cfg.MODEL.ROI_BOX_HEAD.*)
    in_channels = 8
    resolution = 4                    # POOLER_RESOLUTION
    scales = (0.25, 0.125)            # POOLER_SCALES (2 FPN levels)
    sampling_ratio = 2                # POOLER_SAMPLING_RATIO
    representation_size = 128         # MLP_HEAD_DIM
    half_out = False
    input_size = in_channels * resolution ** 2          # 128
    out_dim = representation_size // 2 if half_out else representation_size

    batch = 2
    img_size = 64
    n_rois_per_img = 8
    n_rois = batch * n_rois_per_img

    key = jax.random.PRNGKey(0)
    k_f0, k_f1, k_box1, k_box2, k_w6, k_w7 = jax.random.split(key, 6)

    # FPN feature maps, NCHW
    feats = [
        jax.random.normal(k_f0, (batch, in_channels, 16, 16), jnp.float32),
        jax.random.normal(k_f1, (batch, in_channels, 8, 8), jnp.float32),
    ]

    # Proposals -> rois [N, 5] = (batch_idx, x1, y1, x2, y2) in image coords
    xy1 = jax.random.uniform(k_box1, (n_rois, 2), jnp.float32, 0.0, 40.0)
    wh = jax.random.uniform(k_box2, (n_rois, 2), jnp.float32, 4.0, 24.0)
    xy2 = jnp.minimum(xy1 + wh, float(img_size - 1))
    batch_idx = jnp.repeat(jnp.arange(batch, dtype=jnp.float32), n_rois_per_img)[:, None]
    rois = jnp.concatenate([batch_idx, xy1, xy2], axis=1)

    # fc6 / fc7 parameters (deterministic, make_fc-style init)
    w6, b6 = make_fc_params(k_w6, input_size, representation_size)
    w7, b7 = make_fc_params(k_w7, representation_size, out_dim)

    # Weight pad + bf16 cast hoisted out of the per-call path (done once).
    prepared = prepare_mlp_params(w6, b6, w7, b7)

    out = fpn2mlp_forward(
        feats, rois, prepared,
        scales=scales, resolution=resolution, sampling_ratio=sampling_ratio,
    )
    out = jax.block_until_ready(out)
    assert out.shape == (n_rois, out_dim)

    # Plain-JAX reference of the MLP head, mirroring the kernel's bf16 operand
    # casts (f32 accumulation, f32 bias/ReLU, bf16 hand-off between the dots).
    pooled = fpn_pooler(feats, rois, scales, resolution, sampling_ratio)
    x_flat = pooled.reshape(n_rois, -1)
    xb = x_flat.astype(jnp.bfloat16).astype(jnp.float32)
    w6b = w6.astype(jnp.bfloat16).astype(jnp.float32)
    w7b = w7.astype(jnp.bfloat16).astype(jnp.float32)
    h_ref = jnp.maximum(xb @ w6b + b6, 0.0)
    h_ref = h_ref.astype(jnp.bfloat16).astype(jnp.float32)
    ref = np.asarray(jnp.maximum(h_ref @ w7b + b7, 0.0))

    np.testing.assert_allclose(np.asarray(out), ref, rtol=5e-3, atol=5e-3)

    # Exercise BOTH kernel variants explicitly (resident-W6 for big-VMEM parts,
    # K-tiled streaming for v7x's 64 MiB) against the same reference.
    x_bf16 = x_flat.astype(jnp.bfloat16)
    for variant in ("resident", "tiled"):
        o_v = jax.block_until_ready(
            mlp_head(x_bf16, prepared, force_variant=variant)
        )
        assert o_v.shape == (n_rois, out_dim)
        np.testing.assert_allclose(np.asarray(o_v), ref, rtol=5e-3, atol=5e-3)

    print("KERNEL_OK")
</pallas_src>

<mosaic_0001>
module attributes {stable_mosaic.version = 11 : i64} {
  func.func @_mlp_head_kernel_resident(%arg0: i32, %arg1: memref<16x128xbf16, #tpu.memory_space<vmem>>, %arg2: memref<128x128xbf16, #tpu.memory_space<vmem>>, %arg3: memref<1x128xf32, #tpu.memory_space<vmem>>, %arg4: memref<128x128xbf16, #tpu.memory_space<vmem>>, %arg5: memref<1x128xf32, #tpu.memory_space<vmem>>, %arg6: memref<16x128xf32, #tpu.memory_space<vmem>>) attributes {dimension_semantics = [#tpu.dimension_semantics<parallel>], iteration_bounds = array<i64: 1>, scalar_prefetch = 0 : i64, scratch_operands = 0 : i64, tpu.core_type = #tpu.core_type<tc>, window_params = [{transform_indices = @transform_0, window_bounds = array<i64: 16, 128>}, {pipeline_mode = #tpu.pipeline_mode<synchronous>, transform_indices = @transform_1, window_bounds = array<i64: 128, 128>}, {pipeline_mode = #tpu.pipeline_mode<synchronous>, transform_indices = @transform_2, window_bounds = array<i64: 1, 128>}, {pipeline_mode = #tpu.pipeline_mode<synchronous>, transform_indices = @transform_3, window_bounds = array<i64: 128, 128>}, {pipeline_mode = #tpu.pipeline_mode<synchronous>, transform_indices = @transform_4, window_bounds = array<i64: 1, 128>}, {transform_indices = @transform_5, window_bounds = array<i64: 16, 128>}]} {
    %c0 = arith.constant 0 : index
    %c0_0 = arith.constant 0 : index
    %0 = vector.load %arg1[%c0, %c0_0] : memref<16x128xbf16, #tpu.memory_space<vmem>>, vector<16x128xbf16>
    %c0_1 = arith.constant 0 : index
    %c0_2 = arith.constant 0 : index
    %1 = vector.load %arg2[%c0_1, %c0_2] : memref<128x128xbf16, #tpu.memory_space<vmem>>, vector<128x128xbf16>
    %cst = arith.constant dense<0.000000e+00> : vector<16x128xf32>
    %2 = tpu.matmul %0, %1, %cst {dimension_numbers = #tpu.dot_dimension_numbers<[1], [0], [0], [1], [0, 0, 1, 1], [], []>} : vector<16x128xbf16>, vector<128x128xbf16>, vector<16x128xf32> -> vector<16x128xf32>
    %c0_3 = arith.constant 0 : index
    %c0_4 = arith.constant 0 : index
    %3 = vector.load %arg3[%c0_3, %c0_4] : memref<1x128xf32, #tpu.memory_space<vmem>>, vector<1x128xf32>
    %4 = vector.broadcast %3 : vector<1x128xf32> to vector<16x128xf32>
    %5 = arith.addf %2, %4 : vector<16x128xf32>
    %cst_5 = arith.constant 0.000000e+00 : f32
    %6 = vector.broadcast %cst_5 : f32 to vector<16x128xf32>
    %7 = arith.maximumf %5, %6 : vector<16x128xf32>
    %8 = arith.truncf %7 : vector<16x128xf32> to vector<16x128xbf16>
    %c0_6 = arith.constant 0 : index
    %c0_7 = arith.constant 0 : index
    %9 = vector.load %arg4[%c0_6, %c0_7] : memref<128x128xbf16, #tpu.memory_space<vmem>>, vector<128x128xbf16>
    %cst_8 = arith.constant dense<0.000000e+00> : vector<16x128xf32>
    %10 = tpu.matmul %8, %9, %cst_8 {dimension_numbers = #tpu.dot_dimension_numbers<[1], [0], [0], [1], [0, 0, 1, 1], [], []>} : vector<16x128xbf16>, vector<128x128xbf16>, vector<16x128xf32> -> vector<16x128xf32>
    %c0_9 = arith.constant 0 : index
    %c0_10 = arith.constant 0 : index
    %11 = vector.load %arg5[%c0_9, %c0_10] : memref<1x128xf32, #tpu.memory_space<vmem>>, vector<1x128xf32>
    %12 = vector.broadcast %11 : vector<1x128xf32> to vector<16x128xf32>
    %13 = arith.addf %10, %12 : vector<16x128xf32>
    %cst_11 = arith.constant 0.000000e+00 : f32
    %14 = vector.broadcast %cst_11 : f32 to vector<16x128xf32>
    %15 = arith.maximumf %13, %14 : vector<16x128xf32>
    %c0_12 = arith.constant 0 : index
    %c0_13 = arith.constant 0 : index
    %16 = vector.load %arg6[%c0_12, %c0_13] : memref<16x128xf32, #tpu.memory_space<vmem>>, vector<16x128xf32>
    tpu.vector_store %arg6[%c0_12, %c0_13], %15 {strides = array<i32>} : memref<16x128xf32, #tpu.memory_space<vmem>>, vector<16x128xf32>,
    return
  }
  func.func @transform_0(%arg0: i32) -> (i32, i32) {
    %c0_i32 = arith.constant 0 : i32
    %c0_i32_0 = arith.constant 0 : i32
    return %arg0, %c0_i32 : i32, i32
  }
  func.func @transform_1(%arg0: i32) -> (i32, i32) {
    %c0_i32 = arith.constant 0 : i32
    %c0_i32_0 = arith.constant 0 : i32
    %c0_i32_1 = arith.constant 0 : i32
    return %c0_i32, %c0_i32_0 : i32, i32
  }
  func.func @transform_2(%arg0: i32) -> (i32, i32) {
    %c0_i32 = arith.constant 0 : i32
    %c0_i32_0 = arith.constant 0 : i32
    %c0_i32_1 = arith.constant 0 : i32
    return %c0_i32, %c0_i32_0 : i32, i32
  }
  func.func @transform_3(%arg0: i32) -> (i32, i32) {
    %c0_i32 = arith.constant 0 : i32
    %c0_i32_0 = arith.constant 0 : i32
    %c0_i32_1 = arith.constant 0 : i32
    return %c0_i32, %c0_i32_0 : i32, i32
  }
  func.func @transform_4(%arg0: i32) -> (i32, i32) {
    %c0_i32 = arith.constant 0 : i32
    %c0_i32_0 = arith.constant 0 : i32
    %c0_i32_1 = arith.constant 0 : i32
    return %c0_i32, %c0_i32_0 : i32, i32
  }
  func.func @transform_5(%arg0: i32) -> (i32, i32) {
    %c0_i32 = arith.constant 0 : i32
    %c0_i32_0 = arith.constant 0 : i32
    return %arg0, %c0_i32 : i32, i32
  }
}

</mosaic_0001>

<bundles_post_ra>
// kernel: tpu_custom_call.1
= control target key start
LH: loop header
LB: loop body
LE: loop exit
PB: predicated region body
PF: predicated region fallthrough
CT: control target
= control target key end

     0   :  { %10 = vsyncpa [#allocation3], 0  ;;  %s520_s0 = inlined_call_operand.hbm [shape: bf16[16,128], index: 0, kind: input, shape index: {}]   ;;  %s521_s1 = inlined_call_operand.hbm [shape: bf16[128,128], index: 1, kind: input, shape index: {}]   ;;  %s522_s2 = inlined_call_operand.vmem [shape: f32[1,128], index: 2, kind: input, shape index: {}]   ;;  %s523_s3 = inlined_call_operand.hbm [shape: bf16[128,128], index: 3, kind: input, shape index: {}]   ;;  %s524_s4 = inlined_call_operand.vmem [shape: f32[1,128], index: 4, kind: input, shape index: {}]   ;;  %s525_s5 = inlined_call_operand.hbm [shape: f32[16,128], index: 5, kind: output, shape index: {}]  }
   0x1   :  { %11 = vsyncpa [#allocation6], 0 }
   0x2   :  { %12 = vsyncpa [#allocation4], 0  ;;  %s30_s20 = sshll.u32 %s521_s1, 4  ;;  %s464_s21 = smov [#allocation5]   ;;  %s31_s20 = int_to_ptr.hbm [resolvable:$true] %s30_s20 }
   0x3   :  { %s32_s22 = sshll.u32 %s464_s21, 4  ;;  %s17_s25 = sshll.u32 %s520_s0, 4  ;;  %s33_s22 = int_to_ptr.vmem [resolvable:$true] %s32_s22  ;;  %s18_s25 = int_to_ptr.hbm [resolvable:$true] %s17_s25 }
   0x4   :  { %s465_s26 = smov 64   ;;  %s466_s27 = smov 4  }
   0x5   :  { %38 = dma.hbm_to_vmem [thread:$0]  %s31_s20, 1024, %s33_s22, [#allocation6], %s465_s26, %s465_s26, %s466_s27  }
   0x6   :  { %s467_s28 = smov [#allocation2]   ;;  %s45_s7 = sshll.u32 %s523_s3, 4  ;;  %s46_s7 = int_to_ptr.hbm [resolvable:$true] %s45_s7 }
   0x7   :  { %s19_s29 = sshll.u32 %s467_s28, 4  ;;  %s468_s1 = smov [#allocation7]   ;;  %s20_s29 = int_to_ptr.vmem [resolvable:$true] %s19_s29 }
   0x8   :  { %25 = dma.hbm_to_vmem [thread:$0]  %s18_s25, 128, %s20_s29, [#allocation3], %s465_s26, %s465_s26, %s466_s27  }
   0x9   :  { %s47_s8 = sshll.u32 %s468_s1, 4  ;;  %s48_s8 = int_to_ptr.vmem [resolvable:$true] %s47_s8 }
   0xa   :  { %53 = dma.hbm_to_vmem [thread:$0]  %s46_s7, 1024, %s48_s8, [#allocation6], %s465_s26, %s465_s26, %s466_s27  }
   0xb   :  { %458 = dma.done.wait [#allocation3], 128  }
   0xc   :  { %459 = vsyncadd [#allocation3], 4294967168 }
   0xd   :  { %460 = dma.done.wait [#allocation6], 2048  }
   0xe   :  { %461 = vsyncadd [#allocation6], 4294965248  ;;  %v343_v0 = vld [vmem:[#allocation5 + $0x38] sm:$0xff]  ;;  %v342_v1 = vld [vmem:[#allocation5 + $0x30] sm:$0xff]  ;;  %s469_s11 = smov [#allocation8]   ;;  %s470_s15 = smov 128  }
   0xf   :  { %144 = vmatpush.bf16.msra.mxu0 %v343_v0  ;;  %v351_v2 = vld [vmem:[#allocation7 + $0x38] sm:$0xff]  ;;  %v350_v3 = vld [vmem:[#allocation7 + $0x30] sm:$0xff]  ;;  %v341_v4 = vld [vmem:[#allocation5 + $0x28] sm:$0xff]  ;;  %s251_s12 = sshll.u32 %s469_s11, 4  ;;  %s471_s16 = smov 8   ;;  %s252_s12 = int_to_ptr.vmem [resolvable:$true] %s251_s12 }
  0x10   :  { %229 = vmatpush.bf16.msra.mxu1 %v351_v2  ;;  %v349_v5 = vld [vmem:[#allocation7 + $0x28] sm:$0xff]  ;;  %v340_v6 = vld [vmem:[#allocation5 + $0x20] sm:$0xff]  ;;  %v339_v8 = vld [vmem:[#allocation5 + $0x18] sm:$0xff] }
  0x11   :  { %v348_v7 = vld [vmem:[#allocation7 + $0x20] sm:$0xff]  ;;  %v338_v9 = vld [vmem:[#allocation5 + $0x10] sm:$0xff]  ;;  %v337_v10 = vld [vmem:[#allocation5 + $0x8] sm:$0xff] }
  0x12   :  { %v336_v11 = vld [vmem:[#allocation5] sm:$0xff]  ;;  %v335_v12 = vld [vmem:[#allocation2] sm:$0xff]  ;;  %v346_v14 = vld [vmem:[#allocation7 + $0x10] sm:$0xff] }
  0x13   :  { %145 = vmatpush.bf16.msra.mxu0 %v342_v1  ;;  %v347_v13 = vld [vmem:[#allocation7 + $0x18] sm:$0xff]  ;;  %v345_v15 = vld [vmem:[#allocation7 + $0x8] sm:$0xff]  ;;  %v344_v16 = vld [vmem:[#allocation7] sm:$0xff] }
  0x14   :  { %230 = vmatpush.bf16.msra.mxu1 %v350_v3  ;;  %v360_v18 = vld [vmem:[%s522_s2] ss:$0 sm:$0xff]  ;;  %s253_s2 = sshll.u32 %s525_s5, 4  ;;  %s254_s2 = int_to_ptr.hbm [resolvable:$true] %s253_s2 }
  0x15   :  { %v361_v25 = vld [vmem:[%s524_s4] ss:$0 sm:$0xff] }
  0x17   :  { %146 = vmatpush.bf16.msra.mxu0 %v341_v4 }
  0x18   :  { %231 = vmatpush.bf16.msra.mxu1 %v349_v5 }
  0x1b   :  { %147 = vmatpush.bf16.msra.mxu0 %v340_v6 }
  0x1c   :  { %232 = vmatpush.bf16.msra.mxu1 %v348_v7 }
  0x1f   :  { %148 = vmatpush.bf16.msra.mxu0 %v339_v8 }
  0x20   :  { %233 = vmatpush.bf16.msra.mxu1 %v347_v13 }
  0x23   :  { %149 = vmatpush.bf16.msra.mxu0 %v338_v9 }
  0x24   :  { %234 = vmatpush.bf16.msra.mxu1 %v346_v14 }
  0x27   :  { %150 = vmatpush.bf16.msra.mxu0 %v337_v10 }
  0x28   :  { %235 = vmatpush.bf16.msra.mxu1 %v345_v15 }
  0x2b   :  { %151 = vmatpush.bf16.msra.mxu0 %v336_v11 }
  0x2c   :  { %236 = vmatpush.bf16.msra.mxu1 %v344_v16 }
  0x2e   :  { %152 = vmatmul.bf16.vlgmr.msra.gmra.mxu0 %v335_v12 }
  0xab   :  { %v153_v17 = vpop.f32.mrf.mxu0 }
  0xac   :  { %v154_v19 = vadd.f32 %v360_v18, %v153_v17 }
  0xae   :  { %v158_v22 = vmax.f32 %v154_v19, 0.0 }
  0xb3   :  { %v155_v20 = vpop.f32.mrf.mxu0 }
  0xb4   :  { %v156_v21 = vadd.f32 %v360_v18, %v155_v20 }
  0xb6   :  { %v159_v23 = vmax.f32 %v156_v21, 0.0 }
  0xb8   :  { %v160_v24 = vpack.c.bf16 %v159_v23, %v158_v22 }
  0xba   :  { %237 = vmatmul.bf16.vlgmr.msra.gmra.mxu1 %v160_v24 }
 0x137   :  { %v238_v26 = vpop.f32.mrf.mxu1 }
 0x138   :  { %v239_v27 = vadd.f32 %v361_v25, %v238_v26 }
 0x13a   :  { %v243_v28 = vmax.f32 %v239_v27, 0.0 }
 0x13c   :  { %245 = vst [vmem:[#allocation8] sm:$0xff] %v243_v28 }
 0x13f   :  { %v240_v29 = vpop.f32.mrf.mxu1 }
 0x140   :  { %v241_v30 = vadd.f32 %v361_v25, %v240_v29 }
 0x142   :  { %v244_v31 = vmax.f32 %v241_v30, 0.0 }
 0x144   :  { %246 = vst [vmem:[#allocation8 + $0x8] sm:$0xff] %v244_v31 }
 0x145   :  { %259 = dma.vmem_to_hbm [thread:$0]  %s252_s12, 256, %s254_s2, [#allocation4], %s470_s15, %s470_s15, %s471_s16  }
 0x146   :  { %462 = dma.done.wait [#allocation4], 256  }
 0x147   :  { %463 = vsyncadd [#allocation4], 4294967040 }
 0x148   :  { %264 = vsyncpa [#allocation3], 1 }
 0x149   :  { %265 = vsyncpa [#allocation6], 1 }
 0x14a   :  { %266 = vsyncpa [#allocation4], 1 }

</bundles_post_ra>
